<compile_context>
chip_gen: v5e
topology: v5e:2x2
jax: 0.10.0
libtpu: 0.0.40
codegen_flags: <defaults>
</compile_context>

<pallas_src>
import jax
import jax.numpy as jnp
from jax.experimental import pallas as pl
from jax.experimental.pallas import tpu as pltpu

N_ACTIONS = 3
N_STATES = 6
IN_DIM = N_STATES * 2   # 12
H1 = 512
H2 = 256
OUT_PAD = 128           # lane-dense padded width for the fc3 output
ROW_ALIGN = 16          # 16-row tiles: bf16 sublane packing friendly
TB_MAX = 1024           # max batch-tile rows per grid step (~7 MiB VMEM)
MIN_SPLIT_ROWS = 256    # once tiles would be >= this, allow >=2 tiles (v7x megacore)


def _mlp_kernel(x_ref, w1_ref, b1_ref, w2_ref, b2_ref, w3_ref, b3_ref, o_ref):
    # bf16 operands on the MXU, f32 accumulation; bias/ReLU in f32.
    x = x_ref[...].astype(jnp.bfloat16)                                 # (TB, 12)
    h1 = jnp.dot(x, w1_ref[...], preferred_element_type=jnp.float32)    # (TB, 512)
    h1 = jnp.maximum(h1 + b1_ref[...], 0.0)
    h2 = jnp.dot(h1.astype(jnp.bfloat16), w2_ref[...],
                 preferred_element_type=jnp.float32)                    # (TB, 256)
    h2 = jnp.maximum(h2 + b2_ref[...], 0.0)
    out = jnp.dot(h2.astype(jnp.bfloat16), w3_ref[...],
                  preferred_element_type=jnp.float32)                   # (TB, 128)
    # bf16 store: lane-dense (128 wide), half the HBM writeback of f32.
    o_ref[...] = (out + b3_ref[...]).astype(o_ref.dtype)


def _choose_tiles(batch):
    """Pick (tile_rows, n_tiles, padded_rows) with minimal padding.

    - rows aligned to 16 (bf16 sublane packing for the output tile)
    - at most TB_MAX rows per tile
    - >= 2 tiles once the batch is big enough (>= 2*MIN_SPLIT_ROWS) so the
      'parallel' grid axis can use both v7x TensorCores; small batches stay
      a single tile to avoid extra per-step overhead on 1-TC chips.
    """
    rows = ROW_ALIGN * pl.cdiv(max(batch, 1), ROW_ALIGN)
    n_tiles = pl.cdiv(rows, TB_MAX)
    if rows >= 2 * MIN_SPLIT_ROWS:
        n_tiles = max(n_tiles, 2)
    tb = ROW_ALIGN * pl.cdiv(rows, ROW_ALIGN * n_tiles)
    return tb, n_tiles, n_tiles * tb


def net_forward(x, params):
    """Forward pass of Net. x: (batch, 12) float32. Returns (batch, 3) float32."""
    w1, b1, w2, b2, w3p, b3p = params
    batch = x.shape[0]

    tb, n_tiles, padded = _choose_tiles(batch)
    if padded != batch:
        x = jnp.pad(x, ((0, padded - batch), (0, 0)))

    const = lambda shape: pl.BlockSpec(shape, lambda i: (0,) * len(shape))

    out_padded = pl.pallas_call(
        _mlp_kernel,
        out_shape=jax.ShapeDtypeStruct((padded, OUT_PAD), jnp.bfloat16),
        grid=(n_tiles,),
        in_specs=[
            pl.BlockSpec((tb, IN_DIM), lambda i: (i, 0)),   # x: batch-tiled
            const(w1.shape), const(b1.shape),               # weights: VMEM-resident
            const(w2.shape), const(b2.shape),
            const(w3p.shape), const(b3p.shape),
        ],
        out_specs=pl.BlockSpec((tb, OUT_PAD), lambda i: (i, 0)),
        compiler_params=pltpu.CompilerParams(
            dimension_semantics=("parallel",)),
    )(x, w1, b1, w2, b2, w3p, b3p)

    return out_padded[:batch, :N_ACTIONS].astype(jnp.float32)


def init_params(key):
    """Deterministic synthetic parameters matching the PyTorch module's shapes.

    PyTorch stores Linear weight as (out, in); here they are transposed to
    (in, out) and cast to bf16. Weights ~ N(0, 0.1) to match
    `weight.data.normal_(0, 0.1)`; biases use the default nn.Linear
    U(-1/sqrt(fan_in), 1/sqrt(fan_in)) init and stay f32. fc3's weight/bias
    are zero-padded from 3 to OUT_PAD output columns for lane-dense stores.
    """
    ks = jax.random.split(key, 6)

    def w(k, fan_in, fan_out):
        return (0.1 * jax.random.normal(k, (fan_in, fan_out))).astype(jnp.bfloat16)

    def b(k, fan_in, fan_out):
        bound = 1.0 / jnp.sqrt(fan_in)
        return jax.random.uniform(
            k, (1, fan_out), minval=-bound, maxval=bound).astype(jnp.float32)

    w1 = w(ks[0], IN_DIM, H1); b1 = b(ks[1], IN_DIM, H1)
    w2 = w(ks[2], H1, H2);     b2 = b(ks[3], H1, H2)
    w3 = w(ks[4], H2, N_ACTIONS); b3 = b(ks[5], H2, N_ACTIONS)

    # Zero-pad fc3 to a lane-dense 128-wide output.
    w3p = jnp.zeros((H2, OUT_PAD), jnp.bfloat16).at[:, :N_ACTIONS].set(w3)
    b3p = jnp.zeros((1, OUT_PAD), jnp.float32).at[:, :N_ACTIONS].set(b3)
    return (w1, b1, w2, b2, w3p, b3p)


def net_forward_ref(x, params):
    """Pure-JAX reference mirroring the kernel math (bf16 operands, f32 acc,
    bf16 final store)."""
    w1, b1, w2, b2, w3p, b3p = params
    h1 = jnp.maximum(
        jnp.dot(x.astype(jnp.bfloat16), w1, preferred_element_type=jnp.float32) + b1, 0.0)
    h2 = jnp.maximum(
        jnp.dot(h1.astype(jnp.bfloat16), w2, preferred_element_type=jnp.float32) + b2, 0.0)
    out = jnp.dot(h2.astype(jnp.bfloat16), w3p, preferred_element_type=jnp.float32) + b3p
    return out[:, :N_ACTIONS].astype(jnp.bfloat16).astype(jnp.float32)


if __name__ == "__main__":
    key = jax.random.PRNGKey(0)
    pkey, xkey1, xkey2 = jax.random.split(key, 3)
    params = init_params(pkey)

    # Small batch (single tile), exact multiple of 8.
    x1 = jax.random.normal(xkey1, (8, IN_DIM), dtype=jnp.float32)
    out1 = jax.block_until_ready(net_forward(x1, params))
    ref1 = net_forward_ref(x1, params)
    assert out1.shape == (8, N_ACTIONS)
    assert jnp.allclose(out1, ref1, atol=1e-2, rtol=1e-2), "mismatch vs reference (batch=8)"

    # Ragged batch (exercises 16-row padding + slice-off of garbage rows).
    x2 = jax.random.normal(xkey2, (20, IN_DIM), dtype=jnp.float32)
    out2 = jax.block_until_ready(net_forward(x2, params))
    ref2 = net_forward_ref(x2, params)
    assert out2.shape == (20, N_ACTIONS)
    assert jnp.allclose(out2, ref2, atol=1e-2, rtol=1e-2), "mismatch vs reference (batch=20)"

    print("KERNEL_OK")
</pallas_src>

<mosaic_0001>
module attributes {stable_mosaic.version = 11 : i64} {
  func.func @_mlp_kernel(%arg0: i32, %arg1: memref<16x12xf32, #tpu.memory_space<vmem>>, %arg2: memref<12x512xbf16, #tpu.memory_space<vmem>>, %arg3: memref<1x512xf32, #tpu.memory_space<vmem>>, %arg4: memref<512x256xbf16, #tpu.memory_space<vmem>>, %arg5: memref<1x256xf32, #tpu.memory_space<vmem>>, %arg6: memref<256x128xbf16, #tpu.memory_space<vmem>>, %arg7: memref<1x128xf32, #tpu.memory_space<vmem>>, %arg8: memref<16x128xbf16, #tpu.memory_space<vmem>>) attributes {dimension_semantics = [#tpu.dimension_semantics<parallel>], iteration_bounds = array<i64: 1>, scalar_prefetch = 0 : i64, scratch_operands = 0 : i64, tpu.core_type = #tpu.core_type<tc>, window_params = [{transform_indices = @transform_0, window_bounds = array<i64: 16, 12>}, {pipeline_mode = #tpu.pipeline_mode<synchronous>, transform_indices = @transform_1, window_bounds = array<i64: 12, 512>}, {pipeline_mode = #tpu.pipeline_mode<synchronous>, transform_indices = @transform_2, window_bounds = array<i64: 1, 512>}, {pipeline_mode = #tpu.pipeline_mode<synchronous>, transform_indices = @transform_3, window_bounds = array<i64: 512, 256>}, {pipeline_mode = #tpu.pipeline_mode<synchronous>, transform_indices = @transform_4, window_bounds = array<i64: 1, 256>}, {pipeline_mode = #tpu.pipeline_mode<synchronous>, transform_indices = @transform_5, window_bounds = array<i64: 256, 128>}, {pipeline_mode = #tpu.pipeline_mode<synchronous>, transform_indices = @transform_6, window_bounds = array<i64: 1, 128>}, {transform_indices = @transform_7, window_bounds = array<i64: 16, 128>}]} {
    %c0 = arith.constant 0 : index
    %c0_0 = arith.constant 0 : index
    %0 = vector.load %arg1[%c0, %c0_0] : memref<16x12xf32, #tpu.memory_space<vmem>>, vector<16x12xf32>
    %1 = arith.truncf %0 : vector<16x12xf32> to vector<16x12xbf16>
    %c0_1 = arith.constant 0 : index
    %c0_2 = arith.constant 0 : index
    %2 = vector.load %arg2[%c0_1, %c0_2] : memref<12x512xbf16, #tpu.memory_space<vmem>>, vector<12x512xbf16>
    %cst = arith.constant dense<0.000000e+00> : vector<16x512xf32>
    %3 = tpu.matmul %1, %2, %cst {dimension_numbers = #tpu.dot_dimension_numbers<[1], [0], [0], [1], [0, 0, 1, 1], [], []>} : vector<16x12xbf16>, vector<12x512xbf16>, vector<16x512xf32> -> vector<16x512xf32>
    %c0_3 = arith.constant 0 : index
    %c0_4 = arith.constant 0 : index
    %4 = vector.load %arg3[%c0_3, %c0_4] : memref<1x512xf32, #tpu.memory_space<vmem>>, vector<1x512xf32>
    %5 = vector.broadcast %4 : vector<1x512xf32> to vector<16x512xf32>
    %6 = arith.addf %3, %5 : vector<16x512xf32>
    %cst_5 = arith.constant 0.000000e+00 : f32
    %7 = vector.broadcast %cst_5 : f32 to vector<16x512xf32>
    %8 = arith.maximumf %6, %7 : vector<16x512xf32>
    %9 = arith.truncf %8 : vector<16x512xf32> to vector<16x512xbf16>
    %c0_6 = arith.constant 0 : index
    %c0_7 = arith.constant 0 : index
    %10 = vector.load %arg4[%c0_6, %c0_7] : memref<512x256xbf16, #tpu.memory_space<vmem>>, vector<512x256xbf16>
    %cst_8 = arith.constant dense<0.000000e+00> : vector<16x256xf32>
    %11 = tpu.matmul %9, %10, %cst_8 {dimension_numbers = #tpu.dot_dimension_numbers<[1], [0], [0], [1], [0, 0, 1, 1], [], []>} : vector<16x512xbf16>, vector<512x256xbf16>, vector<16x256xf32> -> vector<16x256xf32>
    %c0_9 = arith.constant 0 : index
    %c0_10 = arith.constant 0 : index
    %12 = vector.load %arg5[%c0_9, %c0_10] : memref<1x256xf32, #tpu.memory_space<vmem>>, vector<1x256xf32>
    %13 = vector.broadcast %12 : vector<1x256xf32> to vector<16x256xf32>
    %14 = arith.addf %11, %13 : vector<16x256xf32>
    %cst_11 = arith.constant 0.000000e+00 : f32
    %15 = vector.broadcast %cst_11 : f32 to vector<16x256xf32>
    %16 = arith.maximumf %14, %15 : vector<16x256xf32>
    %17 = arith.truncf %16 : vector<16x256xf32> to vector<16x256xbf16>
    %c0_12 = arith.constant 0 : index
    %c0_13 = arith.constant 0 : index
    %18 = vector.load %arg6[%c0_12, %c0_13] : memref<256x128xbf16, #tpu.memory_space<vmem>>, vector<256x128xbf16>
    %cst_14 = arith.constant dense<0.000000e+00> : vector<16x128xf32>
    %19 = tpu.matmul %17, %18, %cst_14 {dimension_numbers = #tpu.dot_dimension_numbers<[1], [0], [0], [1], [0, 0, 1, 1], [], []>} : vector<16x256xbf16>, vector<256x128xbf16>, vector<16x128xf32> -> vector<16x128xf32>
    %c0_15 = arith.constant 0 : index
    %c0_16 = arith.constant 0 : index
    %20 = vector.load %arg7[%c0_15, %c0_16] : memref<1x128xf32, #tpu.memory_space<vmem>>, vector<1x128xf32>
    %21 = vector.broadcast %20 : vector<1x128xf32> to vector<16x128xf32>
    %22 = arith.addf %19, %21 : vector<16x128xf32>
    %23 = arith.truncf %22 : vector<16x128xf32> to vector<16x128xbf16>
    %c0_17 = arith.constant 0 : index
    %c0_18 = arith.constant 0 : index
    %24 = vector.load %arg8[%c0_17, %c0_18] : memref<16x128xbf16, #tpu.memory_space<vmem>>, vector<16x128xbf16>
    tpu.vector_store %arg8[%c0_17, %c0_18], %23 {strides = array<i32>} : memref<16x128xbf16, #tpu.memory_space<vmem>>, vector<16x128xbf16>,
    return
  }
  func.func @transform_0(%arg0: i32) -> (i32, i32) {
    %c0_i32 = arith.constant 0 : i32
    %c0_i32_0 = arith.constant 0 : i32
    return %arg0, %c0_i32 : i32, i32
  }
  func.func @transform_1(%arg0: i32) -> (i32, i32) {
    %c0_i32 = arith.constant 0 : i32
    %c0_i32_0 = arith.constant 0 : i32
    %c0_i32_1 = arith.constant 0 : i32
    return %c0_i32, %c0_i32_0 : i32, i32
  }
  func.func @transform_2(%arg0: i32) -> (i32, i32) {
    %c0_i32 = arith.constant 0 : i32
    %c0_i32_0 = arith.constant 0 : i32
    %c0_i32_1 = arith.constant 0 : i32
    return %c0_i32, %c0_i32_0 : i32, i32
  }
  func.func @transform_3(%arg0: i32) -> (i32, i32) {
    %c0_i32 = arith.constant 0 : i32
    %c0_i32_0 = arith.constant 0 : i32
    %c0_i32_1 = arith.constant 0 : i32
    return %c0_i32, %c0_i32_0 : i32, i32
  }
  func.func @transform_4(%arg0: i32) -> (i32, i32) {
    %c0_i32 = arith.constant 0 : i32
    %c0_i32_0 = arith.constant 0 : i32
    %c0_i32_1 = arith.constant 0 : i32
    return %c0_i32, %c0_i32_0 : i32, i32
  }
  func.func @transform_5(%arg0: i32) -> (i32, i32) {
    %c0_i32 = arith.constant 0 : i32
    %c0_i32_0 = arith.constant 0 : i32
    %c0_i32_1 = arith.constant 0 : i32
    return %c0_i32, %c0_i32_0 : i32, i32
  }
  func.func @transform_6(%arg0: i32) -> (i32, i32) {
    %c0_i32 = arith.constant 0 : i32
    %c0_i32_0 = arith.constant 0 : i32
    %c0_i32_1 = arith.constant 0 : i32
    return %c0_i32, %c0_i32_0 : i32, i32
  }
  func.func @transform_7(%arg0: i32) -> (i32, i32) {
    %c0_i32 = arith.constant 0 : i32
    %c0_i32_0 = arith.constant 0 : i32
    return %arg0, %c0_i32 : i32, i32
  }
}

</mosaic_0001>

<bundles_post_ra>
// kernel: tpu_custom_call.1
= control target key start
LH: loop header
LB: loop body
LE: loop exit
PB: predicated region body
PF: predicated region fallthrough
CT: control target
= control target key end

     0   :  { %12 = vsyncpa [#allocation3], 0  ;;  %s1605_s0 = inlined_call_operand.hbm [shape: f32[16,12], index: 0, kind: input, shape index: {}]   ;;  %s1606_s1 = inlined_call_operand.hbm [shape: bf16[12,512], index: 1, kind: input, shape index: {}]   ;;  %s1607_s2 = inlined_call_operand.hbm [shape: f32[1,512], index: 2, kind: input, shape index: {}]   ;;  %s1608_s3 = inlined_call_operand.hbm [shape: bf16[512,256], index: 3, kind: input, shape index: {}]   ;;  %s1609_s4 = inlined_call_operand.vmem [shape: f32[1,256], index: 4, kind: input, shape index: {}]   ;;  %s1610_s5 = inlined_call_operand.hbm [shape: bf16[256,128], index: 5, kind: input, shape index: {}]   ;;  %s1611_s6 = inlined_call_operand.vmem [shape: f32[1,128], index: 6, kind: input, shape index: {}]   ;;  %s1612_s7 = inlined_call_operand.hbm [shape: bf16[16,128], index: 7, kind: output, shape index: {}]  }
   0x1   :  { %13 = vsyncpa [#allocation6], 0 }
   0x2   :  { %14 = vsyncpa [#allocation9], 0  ;;  %s33_s26 = sshll.u32 %s1606_s1, 4  ;;  %s34_s26 = int_to_ptr.hbm [resolvable:$true] %s33_s26 }
   0x3   :  { %15 = vsyncpa [#allocation4], 0  ;;  %s1509_s27 = smov [#allocation5]   ;;  %s1510_s29 = smov 256  }
   0x4   :  { %s35_s28 = sshll.u32 %s1509_s27, 4  ;;  %s1511_s30 = smov 16   ;;  %s36_s28 = int_to_ptr.vmem [resolvable:$true] %s35_s28 }
   0x5   :  { %41 = dma.hbm_to_vmem [thread:$0]  %s34_s26, 512, %s36_s28, [#allocation6], %s1510_s29, %s1510_s29, %s1511_s30  }
   0x6   :  { %s57_s10 = sshll.u32 %s1608_s3, 4  ;;  %s1512_s11 = smov [#allocation8]   ;;  %s58_s10 = int_to_ptr.hbm [resolvable:$true] %s57_s10 }
   0x7   :  { %s59_s12 = sshll.u32 %s1512_s11, 4  ;;  %s20_s15 = sshll.u32 %s1605_s0, 4  ;;  %s60_s12 = int_to_ptr.vmem [resolvable:$true] %s59_s12  ;;  %s21_s15 = int_to_ptr.hbm [resolvable:$true] %s20_s15 }
   0x8   :  { %s1513_s1 = smov 128   ;;  %s1514_s16 = smov 8  }
   0x9   :  { %65 = dma.hbm_to_vmem [thread:$0]  %s58_s10, 8192, %s60_s12, [#allocation9], %s1513_s1, %s1513_s1, %s1514_s16  }
   0xa   :  { %s47_s19 = sshll.u32 %s1607_s2, 4  ;;  %s1515_s20 = smov [#allocation2]   ;;  %s48_s19 = int_to_ptr.hbm [resolvable:$true] %s47_s19 }
   0xb   :  { %s22_s21 = sshll.u32 %s1515_s20, 4  ;;  %s1516_s3 = smov [#allocation7]   ;;  %s23_s21 = int_to_ptr.vmem [resolvable:$true] %s22_s21 }
   0xc   :  { %28 = dma.hbm_to_vmem [thread:$0]  %s21_s15, 256, %s23_s21, [#allocation3], %s1513_s1, %s1513_s1, %s1514_s16  }
   0xd   :  { %s49_s22 = sshll.u32 %s1516_s3, 4  ;;  %s72_s0 = sshll.u32 %s1610_s5, 4  ;;  %s50_s22 = int_to_ptr.vmem [resolvable:$true] %s49_s22  ;;  %s73_s0 = int_to_ptr.hbm [resolvable:$true] %s72_s0 }
   0xe   :  { %52 = dma.hbm_to_vmem [thread:$0]  %s48_s19, 64, %s50_s22, [#allocation6]  }
   0xf   :  { %s1517_s25 = smov [#allocation10]   ;;  %s1518_s27 = smov 64  }
  0x10   :  { %s74_s26 = sshll.u32 %s1517_s25, 4  ;;  %s1519_s28 = smov 4   ;;  %s75_s26 = int_to_ptr.vmem [resolvable:$true] %s74_s26 }
  0x11   :  { %80 = dma.hbm_to_vmem [thread:$0]  %s73_s0, 2048, %s75_s26, [#allocation9], %s1518_s27, %s1518_s27, %s1519_s28  }
  0x12   :  { %1501 = dma.done.wait [#allocation3], 256  }
  0x13   :  { %1502 = vsyncadd [#allocation3], 4294967040 }
  0x14   :  { %1503 = dma.done.wait [#allocation6], 576  }
  0x15   :  { %1504 = vsyncadd [#allocation6], 4294966720 }
  0x16   :  { %1505 = dma.done.wait [#allocation9], 10240  }
  0x17   :  { %1506 = vsyncadd [#allocation9], 4294957056  ;;  %vm141_vm0 = vcmask 1045504   ;;  %v917_v0 = vld [vmem:[#allocation5] sm:$0xf]  ;;  %v104_v5 = vld [vmem:[#allocation2] sm:$0xff] }
  0x18   :  { %v1257_v1 = vld [vmem:[#allocation5 + $0xc] sm:$0x30]  ;;  %v1255_v2 = vld [vmem:[#allocation5 + $0x4] sm:$0xf]  ;;  %v919_v4 = vld [vmem:[#allocation5 + $0x10] sm:$0x30] }
  0x19   :  { %v918_v3 = vor.u32 %v1257_v1, %v917_v0  ;;  %v105_v6 = vld [vmem:[#allocation2 + $0x8] sm:$0xff]  ;;  %v922_v7 = vor.u32 %v1255_v2, %v919_v4  ;;  %v925_v8 = vld [vmem:[#allocation5 + $0x8] sm:$0xf]  ;;  %v1256_v10 = vld [vmem:[#allocation5 + $0xc] sm:$0xf]  ;;  %vm137_vm1 = vcmask 97280  }
  0x1a   :  { %v1258_v9 = vld [vmem:[#allocation5 + $0x14] sm:$0x30]  ;;  %v1580_v12 = vpack.c.bf16 %v105_v6, %v104_v5  ;;  %v927_v14 = vld [vmem:[#allocation5 + $0x18] sm:$0x30]  ;;  %v993_v15 = vld [vmem:[#allocation8 + $0x70] sm:$0xf] }
  0x1b   :  { %v143_v11 = vsel %vm141_vm0, %v918_v3, 0  ;;  %v926_v13 = vor.u32 %v1258_v9, %v925_v8  ;;  %v146_v16 = vsel %vm141_vm0, %v922_v7, 0  ;;  %v930_v17 = vor.u32 %v1256_v10, %v927_v14  ;;  %v1274_v18 = vld [vmem:[#allocation8 + $0x74] sm:$0xf0]  ;;  %v1057_v19 = vld [vmem:[#allocation8 + $0xf0] sm:$0xf] }
  0x1c   :  { %161 = vmatpush.bf16.msra.mxu2 %v143_v11  ;;  %175 = vmatpush.bf16.msra.mxu3 %v146_v16  ;;  %v994_v21 = vor.u32 %v1274_v18, %v993_v15  ;;  %v1290_v22 = vld [vmem:[#allocation8 + $0xf4] sm:$0xf0]  ;;  %v985_v23 = vld [vmem:[#allocation8 + $0x60] sm:$0xf]  ;;  %v1272_v26 = vld [vmem:[#allocation8 + $0x64] sm:$0xf0] }
  0x1d   :  { %v149_v20 = vsel %vm141_vm0, %v926_v13, 0  ;;  %v152_v24 = vsel %vm141_vm0, %v930_v17, 0  ;;  %v1058_v25 = vor.u32 %v1290_v22, %v1057_v19  ;;  %v1049_v27 = vld [vmem:[#allocation8 + $0xe0] sm:$0xf]  ;;  %v1288_v28 = vld [vmem:[#allocation8 + $0xe4] sm:$0xf0]  ;;  %v986_v29 = vor.u32 %v1272_v26, %v985_v23 }
  0x1e   :  { %612 = vmatpush.bf16.msra.mxu0 %v994_v21  ;;  %v1050_v30 = vor.u32 %v1288_v28, %v1049_v27  ;;  %v977_v31 = vld [vmem:[#allocation8 + $0x50] sm:$0xf]  ;;  %v1270_v32 = vld [vmem:[#allocation8 + $0x54] sm:$0xf0]  ;;  %v969_v38 = vld [vmem:[#allocation8 + $0x40] sm:$0xf] }
  0x1f   :  { %931 = vmatmul.msk.bf16.vlgmr.msra.gmra.mxu2 %vm137_vm1, %v1580_v12  ;;  %932 = vmatmul.msk.bf16.vlgmr.msra.gmra.mxu3 %vm137_vm1, %v1580_v12  ;;  %v1041_v33 = vld [vmem:[#allocation8 + $0xd0] sm:$0xf]  ;;  %v1286_v34 = vld [vmem:[#allocation8 + $0xd4] sm:$0xf0]  ;;  %v978_v37 = vor.u32 %v1270_v32, %v977_v31  ;;  %v1268_v43 = vld [vmem:[#allocation8 + $0x44] sm:$0xf0] }
  0x20   :  { %189 = vmatpush.bf16.msrb.mxu2 %v149_v20  ;;  %203 = vmatpush.bf16.msrb.mxu3 %v152_v24  ;;  %v1121_v35 = vld [vmem:[#allocation8 + $0x170] sm:$0xf]  ;;  %v1306_v36 = vld [vmem:[#allocation8 + $0x174] sm:$0xf0]  ;;  %v1042_v42 = vor.u32 %v1286_v34, %v1041_v33  ;;  %v1033_v44 = vld [vmem:[#allocation8 + $0xc0] sm:$0xf]  ;;  %v970_v52 = vor.u32 %v1268_v43, %v969_v38 }
  0x21   :  { %626 = vmatpush.bf16.msra.mxu1 %v1058_v25  ;;  %v1122_v39 = vor.u32 %v1306_v36, %v1121_v35  ;;  %v1185_v40 = vld [vmem:[#allocation8 + $0x1f0] sm:$0xf]  ;;  %v1322_v41 = vld [vmem:[#allocation8 + $0x1f4] sm:$0xf0]  ;;  %v1284_v45 = vld [vmem:[#allocation8 + $0xc4] sm:$0xf0] }
  0x22   :  { %613 = vmatpush.bf16.msra.mxu0 %v986_v29  ;;  %v1186_v46 = vor.u32 %v1322_v41, %v1185_v40  ;;  %v1113_v47 = vld [vmem:[#allocation8 + $0x160] sm:$0xf]  ;;  %v1304_v48 = vld [vmem:[#allocation8 + $0x164] sm:$0xf0]  ;;  %v961_v53 = vld [vmem:[#allocation8 + $0x30] sm:$0xf]  ;;  %v1034_v57 = vor.u32 %v1284_v45, %v1033_v44 }
  0x23   :  { %v1177_v49 = vld [vmem:[#allocation8 + $0x1e0] sm:$0xf]  ;;  %v1114_v50 = vor.u32 %v1304_v48, %v1113_v47  ;;  %v1320_v51 = vld [vmem:[#allocation8 + $0x1e4] sm:$0xf0]  ;;  %v1266_v54 = vld [vmem:[#allocation8 + $0x34] sm:$0xf0] }
  0x24   :  { %640 = vmatpush.bf16.msra.mxu2 %v1122_v39  ;;  %654 = vmatpush.bf16.msra.mxu3 %v1186_v46  ;;  %v1178_v55 = vor.u32 %v1320_v51, %v1177_v49  ;;  %v1105_v56 = vld [vmem:[#allocation8 + $0x150] sm:$0xf]  ;;  %v1302_v58 = vld [vmem:[#allocation8 + $0x154] sm:$0xf0]  ;;  %v1097_v1 = vld [vmem:[#allocation8 + $0x140] sm:$0xf]  ;;  %v962_v3 = vor.u32 %v1266_v54, %v961_v53 }
  0x25   :  { %627 = vmatpush.bf16.msra.mxu1 %v1050_v30  ;;  %v1169_v59 = vld [vmem:[#allocation8 + $0x1d0] sm:$0xf]  ;;  %v1318_v60 = vld [vmem:[#allocation8 + $0x1d4] sm:$0xf0]  ;;  %v1106_v63 = vor.u32 %v1302_v58, %v1105_v56  ;;  %v1300_v2 = vld [vmem:[#allocation8 + $0x144] sm:$0xf0] }
  0x26   :  { %614 = vmatpush.bf16.msra.mxu0 %v978_v37  ;;  %v1025_v61 = vld [vmem:[#allocation8 + $0xb0] sm:$0xf]  ;;  %v1282_v62 = vld [vmem:[#allocation8 + $0xb4] sm:$0xf0]  ;;  %v1170_v0 = vor.u32 %v1318_v60, %v1169_v59  ;;  %v1161_v4 = vld [vmem:[#allocation8 + $0x1c0] sm:$0xf]  ;;  %v1098_v11 = vor.u32 %v1300_v2, %v1097_v1 }
  0x27   :  { %v1316_v5 = vld [vmem:[#allocation8 + $0x1c4] sm:$0xf0]  ;;  %v1026_v6 = vor.u32 %v1282_v62, %v1025_v61  ;;  %v953_v7 = vld [vmem:[#allocation8 + $0x20] sm:$0xf]  ;;  %v945_v16 = vld [vmem:[#allocation8 + $0x10] sm:$0xf] }
  0x28   :  { %641 = vmatpush.bf16.msra.mxu2 %v1114_v50  ;;  %655 = vmatpush.bf16.msra.mxu3 %v1178_v55  ;;  %v1264_v8 = vld [vmem:[#allocation8 + $0x24] sm:$0xf0]  ;;  %v1017_v9 = vld [vmem:[#allocation8 + $0xa0] sm:$0xf]  ;;  %v1162_v13 = vor.u32 %v1316_v5, %v1161_v4  ;;  %v1262_v17 = vld [vmem:[#allocation8 + $0x14] sm:$0xf0] }
  0x29   :  { %628 = vmatpush.bf16.msra.mxu1 %v1042_v42  ;;  %v1280_v10 = vld [vmem:[#allocation8 + $0xa4] sm:$0xf0]  ;;  %v954_v14 = vor.u32 %v1264_v8, %v953_v7  ;;  %v1009_v18 = vld [vmem:[#allocation8 + $0x90] sm:$0xf]  ;;  %v1278_v19 = vld [vmem:[#allocation8 + $0x94] sm:$0xf0]  ;;  %v946_v20 = vor.u32 %v1262_v17, %v945_v16 }
  0x2a   :  { %615 = vmatpush.bf16.msra.mxu0 %v970_v52  ;;  %v1018_v15 = vor.u32 %v1280_v10, %v1017_v9  ;;  %v1010_v21 = vor.u32 %v1278_v19, %v1009_v18  ;;  %v937_v22 = vld [vmem:[#allocation8] sm:$0xf]  ;;  %v1260_v23 = vld [vmem:[#allocation8 + $0x4] sm:$0xf0]  ;;  %v1273_v27 = vld [vmem:[#allocation8 + $0x74] sm:$0xf] }
  0x2b   :  { %v1001_v24 = vld [vmem:[#allocation8 + $0x80] sm:$0xf]  ;;  %v1276_v25 = vld [vmem:[#allocation8 + $0x84] sm:$0xf0]  ;;  %v995_v28 = vld [vmem:[#allocation8 + $0x78] sm:$0xf0] }
  0x2c   :  { %642 = vmatpush.bf16.msra.mxu2 %v1106_v63  ;;  %656 = vmatpush.bf16.msra.mxu3 %v1170_v0  ;;  %v1002_v26 = vor.u32 %v1276_v25, %v1001_v24  ;;  %v1289_v29 = vld [vmem:[#allocation8 + $0xf4] sm:$0xf]  ;;  %v998_v30 = vor.u32 %v1273_v27, %v995_v28  ;;  %v1059_v31 = vld [vmem:[#allocation8 + $0xf8] sm:$0xf0]  ;;  %v1089_v33 = vld [vmem:[#allocation8 + $0x130] sm:$0xf] }
  0x2d   :  { %629 = vmatpush.bf16.msra.mxu1 %v1034_v57  ;;  %v1062_v32 = vor.u32 %v1289_v29, %v1059_v31  ;;  %v1298_v34 = vld [vmem:[#allocation8 + $0x134] sm:$0xf0]  ;;  %v1153_v35 = vld [vmem:[#allocation8 + $0x1b0] sm:$0xf]  ;;  %v1271_v38 = vld [vmem:[#allocation8 + $0x64] sm:$0xf] }
  0x2e   :  { %616 = vmatpush.bf16.msra.mxu0 %v962_v3  ;;  %v1090_v36 = vor.u32 %v1298_v34, %v1089_v33  ;;  %v1314_v37 = vld [vmem:[#allocation8 + $0x1b4] sm:$0xf0]  ;;  %v987_v40 = vld [vmem:[#allocation8 + $0x68] sm:$0xf0]  ;;  %v1287_v41 = vld [vmem:[#allocation8 + $0xe4] sm:$0xf] }
  0x2f   :  { %933 = vmatmul.msk.bf16.vlgmr.msrb.gmra.mxu2 %vm137_vm1, %v1580_v12  ;;  %934 = vmatmul.msk.bf16.vlgmr.msrb.gmra.mxu3 %vm137_vm1, %v1580_v12  ;;  %v938_v12 = vor.u32 %v1260_v23, %v937_v22  ;;  %v1154_v39 = vor.u32 %v1314_v37, %v1153_v35  ;;  %v1051_v42 = vld [vmem:[#allocation8 + $0xe8] sm:$0xf0]  ;;  %v990_v43 = vor.u32 %v1271_v38, %v987_v40  ;;  %v1081_v45 = vld [vmem:[#allocation8 + $0x120] sm:$0xf]  ;;  %v1296_v46 = vld [vmem:[#allocation8 + $0x124] sm:$0xf0] }
  0x30   :  { %643 = vmatpush.bf16.msra.mxu2 %v1098_v11  ;;  %657 = vmatpush.bf16.msra.mxu3 %v1162_v13  ;;  %v1054_v44 = vor.u32 %v1287_v41, %v1051_v42  ;;  %v1145_v47 = vld [vmem:[#allocation8 + $0x1a0] sm:$0xf]  ;;  %v1082_v48 = vor.u32 %v1296_v46, %v1081_v45  ;;  %v1312_v49 = vld [vmem:[#allocation8 + $0x1a4] sm:$0xf0]  ;;  %v1269_v51 = vld [vmem:[#allocation8 + $0x54] sm:$0xf] }
  0x31   :  { %630 = vmatpush.bf16.msra.mxu1 %v1026_v6  ;;  %v1146_v50 = vor.u32 %v1312_v49, %v1145_v47  ;;  %v979_v52 = vld [vmem:[#allocation8 + $0x58] sm:$0xf0]  ;;  %v1285_v53 = vld [vmem:[#allocation8 + $0xd4] sm:$0xf]  ;;  %v1073_v57 = vld [vmem:[#allocation8 + $0x110] sm:$0xf] }
  0x32   :  { %617 = vmatpush.bf16.msra.mxu0 %v954_v14  ;;  %v982_v54 = vor.u32 %v1269_v51, %v979_v52  ;;  %v1043_v55 = vld [vmem:[#allocation8 + $0xd8] sm:$0xf0]  ;;  %v1294_v58 = vld [vmem:[#allocation8 + $0x114] sm:$0xf0]  ;;  %v1137_v59 = vld [vmem:[#allocation8 + $0x190] sm:$0xf] }
  0x33   :  { %v1046_v56 = vor.u32 %v1285_v53, %v1043_v55  ;;  %v1074_v60 = vor.u32 %v1294_v58, %v1073_v57  ;;  %v1310_v61 = vld [vmem:[#allocation8 + $0x194] sm:$0xf0]  ;;  %v1267_v62 = vld [vmem:[#allocation8 + $0x44] sm:$0xf]  ;;  %v971_v63 = vld [vmem:[#allocation8 + $0x48] sm:$0xf0] }
  0x34   :  { %644 = vmatpush.bf16.msra.mxu2 %v1090_v36  ;;  %658 = vmatpush.bf16.msra.mxu3 %v1154_v39  ;;  %v1138_v0 = vor.u32 %v1310_v61, %v1137_v59  ;;  %v974_v1 = vor.u32 %v1267_v62, %v971_v63  ;;  %v1283_v2 = vld [vmem:[#allocation8 + $0xc4] sm:$0xf]  ;;  %v1035_v3 = vld [vmem:[#allocation8 + $0xc8] sm:$0xf0]  ;;  %v1065_v5 = vld [vmem:[#allocation8 + $0x100] sm:$0xf] }
  0x35   :  { %631 = vmatpush.bf16.msra.mxu1 %v1018_v15  ;;  %v1038_v4 = vor.u32 %v1283_v2, %v1035_v3  ;;  %v1292_v6 = vld [vmem:[#allocation8 + $0x104] sm:$0xf0]  ;;  %v1129_v7 = vld [vmem:[#allocation8 + $0x180] sm:$0xf]  ;;  %v1265_v10 = vld [vmem:[#allocation8 + $0x34] sm:$0xf] }
  0x36   :  { %618 = vmatpush.bf16.msra.mxu0 %v946_v20  ;;  %v1066_v8 = vor.u32 %v1292_v6, %v1065_v5  ;;  %v1308_v9 = vld [vmem:[#allocation8 + $0x184] sm:$0xf0]  ;;  %v963_v11 = vld [vmem:[#allocation8 + $0x38] sm:$0xf0]  ;;  %v1281_v15 = vld [vmem:[#allocation8 + $0xb4] sm:$0xf] }
  0x37   :  { %v1130_v13 = vor.u32 %v1308_v9, %v1129_v7  ;;  %v966_v14 = vor.u32 %v1265_v10, %v963_v11  ;;  %v1027_v16 = vld [vmem:[#allocation8 + $0xb8] sm:$0xf0]  ;;  %v1305_v17 = vld [vmem:[#allocation8 + $0x174] sm:$0xf]  ;;  %v1263_v24 = vld [vmem:[#allocation8 + $0x24] sm:$0xf] }
  0x38   :  { %645 = vmatpush.bf16.msra.mxu2 %v1082_v48  ;;  %659 = vmatpush.bf16.msra.mxu3 %v1146_v50  ;;  %v1030_v18 = vor.u32 %v1281_v15, %v1027_v16  ;;  %v1123_v19 = vld [vmem:[#allocation8 + $0x178] sm:$0xf0]  ;;  %v1321_v20 = vld [vmem:[#allocation8 + $0x1f4] sm:$0xf]  ;;  %v955_v25 = vld [vmem:[#allocation8 + $0x28] sm:$0xf0] }
  0x39   :  { %632 = vmatpush.bf16.msra.mxu1 %v1010_v21  ;;  %v1126_v21 = vor.u32 %v1305_v17, %v1123_v19  ;;  %v1187_v22 = vld [vmem:[#allocation8 + $0x1f8] sm:$0xf0]  ;;  %v1019_v27 = vld [vmem:[#allocation8 + $0xa8] sm:$0xf0]  ;;  %v1303_v28 = vld [vmem:[#allocation8 + $0x164] sm:$0xf] }
  0x3a   :  { %619 = vmatpush.bf16.msra.mxu0 %v938_v12  ;;  %v1190_v23 = vor.u32 %v1321_v20, %v1187_v22  ;;  %v958_v12 = vor.u32 %v1263_v24, %v955_v25  ;;  %v1319_v31 = vld [vmem:[#allocation8 + $0x1e4] sm:$0xf]  ;;  %v1261_v35 = vld [vmem:[#allocation8 + $0x14] sm:$0xf]  ;;  %v947_v36 = vld [vmem:[#allocation8 + $0x18] sm:$0xf0] }
  0x3b   :  { %v1277_v37 = vld [vmem:[#allocation8 + $0x94] sm:$0xf]  ;;  %v950_v38 = vor.u32 %v1261_v35, %v947_v36  ;;  %v1011_v39 = vld [vmem:[#allocation8 + $0x98] sm:$0xf0]  ;;  %v1259_v47 = vld [vmem:[#allocation8 + $0x4] sm:$0xf] }
  0x3c   :  { %646 = vmatpush.bf16.msra.mxu2 %v1074_v60  ;;  %660 = vmatpush.bf16.msra.mxu3 %v1138_v0  ;;  %v1301_v40 = vld [vmem:[#allocation8 + $0x154] sm:$0xf]  ;;  %v1107_v41 = vld [vmem:[#allocation8 + $0x158] sm:$0xf0]  ;;  %v1014_v42 = vor.u32 %v1277_v37, %v1011_v39  ;;  %v939_v48 = vld [vmem:[#allocation8 + $0x8] sm:$0xf0] }
  0x3d   :  { %633 = vmatpush.bf16.msra.mxu1 %v1002_v26  ;;  %v1279_v26 = vld [vmem:[#allocation8 + $0xa4] sm:$0xf]  ;;  %v1171_v45 = vld [vmem:[#allocation8 + $0x1d8] sm:$0xf0]  ;;  %v942_v50 = vor.u32 %v1259_v47, %v939_v48  ;;  %v1003_v51 = vld [vmem:[#allocation8 + $0x88] sm:$0xf0] }
  0x3e   :  { %668 = vmatpush.bf16.msrb.mxu0 %v998_v30  ;;  %v1022_v29 = vor.u32 %v1279_v26, %v1019_v27  ;;  %v1115_v30 = vld [vmem:[#allocation8 + $0x168] sm:$0xf0]  ;;  %v1275_v49 = vld [vmem:[#allocation8 + $0x84] sm:$0xf]  ;;  %v1297_v59 = vld [vmem:[#allocation8 + $0x134] sm:$0xf] }
  0x3f   :  { %v1118_v33 = vor.u32 %v1303_v28, %v1115_v30  ;;  %v1299_v52 = vld [vmem:[#allocation8 + $0x144] sm:$0xf]  ;;  %v1099_v53 = vld [vmem:[#allocation8 + $0x148] sm:$0xf0]  ;;  %v1091_v60 = vld [vmem:[#allocation8 + $0x138] sm:$0xf0] }
  0x40   :  { %647 = vmatpush.bf16.msra.mxu2 %v1066_v8  ;;  %661 = vmatpush.bf16.msra.mxu3 %v1130_v13  ;;  %v1102_v55 = vor.u32 %v1299_v52, %v1099_v53  ;;  %v1163_v57 = vld [vmem:[#allocation8 + $0x1c8] sm:$0xf0]  ;;  %v1313_v61 = vld [vmem:[#allocation8 + $0x1b4] sm:$0xf]  ;;  %v1094_v62 = vor.u32 %v1297_v59, %v1091_v60  ;;  %v1155_v63 = vld [vmem:[#allocation8 + $0x1b8] sm:$0xf0] }
  0x41   :  { %682 = vmatpush.bf16.msrb.mxu1 %v1062_v32  ;;  %v1179_v32 = vld [vmem:[#allocation8 + $0x1e8] sm:$0xf0]  ;;  %v111_v0 = vld [vmem:[#allocation7] sm:$0xf]  ;;  %v1158_v2 = vor.u32 %v1313_v61, %v1155_v63  ;;  %v1295_v3 = vld [vmem:[#allocation8 + $0x124] sm:$0xf] }
  0x42   :  { %669 = vmatpush.bf16.msrb.mxu0 %v990_v43  ;;  %v1182_v34 = vor.u32 %v1319_v31, %v1179_v32  ;;  %v1110_v43 = vor.u32 %v1301_v40, %v1107_v41  ;;  %v1311_v6 = vld [vmem:[#allocation8 + $0x1a4] sm:$0xf]  ;;  %v1147_v7 = vld [vmem:[#allocation8 + $0x1a8] sm:$0xf0]  ;;  %v113_v8 = vperm.slane %v111_v0, 0  ;;  %v114_v10 = vperm.slane %v111_v0, 1 }
  0x43   :  { %v1150_v11 = vor.u32 %v1311_v6, %v1147_v7  ;;  %v1293_v13 = vld [vmem:[#allocation8 + $0x114] sm:$0xf]  ;;  %v1139_v16 = vld [vmem:[#allocation8 + $0x198] sm:$0xf0]  ;;  %v1291_v22 = vld [vmem:[#allocation8 + $0x104] sm:$0xf] }
  0x44   :  { %696 = vmatpush.bf16.msrb.mxu2 %v1126_v21  ;;  %710 = vmatpush.bf16.msrb.mxu3 %v1190_v23  ;;  %v1309_v15 = vld [vmem:[#allocation8 + $0x194] sm:$0xf]  ;;  %v1067_v23 = vld [vmem:[#allocation8 + $0x108] sm:$0xf0]  ;;  %v116_v39 = vperm.slane %v111_v0, 3  ;;  %v1330_v52 = vld [vmem:[#allocation10 + $0x38] sm:$0xff] }
  0x45   :  { %683 = vmatpush.bf16.msrb.mxu1 %v1054_v44  ;;  %v1317_v44 = vld [vmem:[#allocation8 + $0x1d4] sm:$0xf]  ;;  %v1142_v21 = vor.u32 %v1309_v15, %v1139_v16  ;;  %v1131_v26 = vld [vmem:[#allocation8 + $0x188] sm:$0xf0]  ;;  %v1070_v30 = vor.u32 %v1291_v22, %v1067_v23  ;;  %v1335_v63 = vld [vmem:[#allocation10 + $0x60] sm:$0xff]  ;;  %s1520_s30 = smov [#allocation11]  }
  0x46   :  { %670 = vmatpush.bf16.msrb.mxu0 %v982_v54  ;;  %v1174_v46 = vor.u32 %v1317_v44, %v1171_v45  ;;  %v1006_v54 = vor.u32 %v1275_v49, %v1003_v51  ;;  %v1329_v53 = vld [vmem:[#allocation10 + $0x30] sm:$0xff]  ;;  %v1324_v60 = vld [vmem:[#allocation10 + $0x8] sm:$0xff]  ;;  %s898_s8 = sshll.u32 %s1520_s30, 4  ;;  %s900_s11 = sshll.u32 %s1612_s7, 4  ;;  %s899_s8 = int_to_ptr.vmem [resolvable:$true] %s898_s8  ;;  %s901_s11 = int_to_ptr.hbm [resolvable:$true] %s900_s11 }
  0x47   :  { %v1337_v59 = vld [vmem:[#allocation10 + $0x70] sm:$0xff]  ;;  %v1336_v61 = vld [vmem:[#allocation10 + $0x68] sm:$0xff] }
  0x48   :  { %697 = vmatpush.bf16.msrb.mxu2 %v1118_v33  ;;  %711 = vmatpush.bf16.msrb.mxu3 %v1182_v34 }
  0x49   :  { %684 = vmatpush.bf16.msrb.mxu1 %v1046_v56  ;;  %v1315_v56 = vld [vmem:[#allocation8 + $0x1c4] sm:$0xf] }
  0x4a   :  { %671 = vmatpush.bf16.msrb.mxu0 %v974_v1  ;;  %v1166_v58 = vor.u32 %v1315_v56, %v1163_v57  ;;  %v1326_v56 = vld [vmem:[#allocation10 + $0x18] sm:$0xff] }
  0x4b   :  { %v1338_v57 = vld [vmem:[#allocation10 + $0x78] sm:$0xff] }
  0x4c   :  { %698 = vmatpush.bf16.msrb.mxu2 %v1110_v43  ;;  %712 = vmatpush.bf16.msrb.mxu3 %v1174_v46 }
  0x4d   :  { %685 = vmatpush.bf16.msrb.mxu1 %v1038_v4  ;;  %v1083_v4 = vld [vmem:[#allocation8 + $0x128] sm:$0xf0] }
  0x4e   :  { %672 = vmatpush.bf16.msrb.mxu0 %v966_v14  ;;  %v1086_v9 = vor.u32 %v1295_v3, %v1083_v4  ;;  %v1075_v14 = vld [vmem:[#allocation8 + $0x118] sm:$0xf0]  ;;  %v286_v3 = vld [vmem:[%s1609_s4] sm:$0x3] }
  0x4f   :  { %v288_v6 = vperm.slane %v286_v3, 0  ;;  %v289_v23 = vperm.slane %v286_v3, 1 }
  0x50   :  { %699 = vmatpush.bf16.msrb.mxu2 %v1102_v55  ;;  %713 = vmatpush.bf16.msrb.mxu3 %v1166_v58  ;;  %v1327_v55 = vld [vmem:[#allocation10 + $0x20] sm:$0xff]  ;;  %v1325_v58 = vld [vmem:[#allocation10 + $0x10] sm:$0xff] }
  0x51   :  { %686 = vmatpush.bf16.msrb.mxu1 %v1030_v18  ;;  %v1078_v18 = vor.u32 %v1293_v13, %v1075_v14 }
  0x52   :  { %673 = vmatpush.bf16.msrb.mxu0 %v958_v12  ;;  %v1307_v12 = vld [vmem:[#allocation8 + $0x184] sm:$0xf] }
  0x53   :  { %v1134_v33 = vor.u32 %v1307_v12, %v1131_v26 }
  0x54   :  { %700 = vmatpush.bf16.msrb.mxu2 %v1094_v62  ;;  %714 = vmatpush.bf16.msrb.mxu3 %v1158_v2  ;;  %v1323_v62 = vld [vmem:[#allocation10] sm:$0xff]  ;;  %v1333_v2 = vld [vmem:[#allocation10 + $0x50] sm:$0xff] }
  0x55   :  { %687 = vmatpush.bf16.msrb.mxu1 %v1022_v29 }
  0x56   :  { %674 = vmatpush.bf16.msrb.mxu0 %v950_v38  ;;  %v115_v38 = vperm.slane %v111_v0, 2  ;;  %v1334_v0 = vld [vmem:[#allocation10 + $0x58] sm:$0xff] }
  0x58   :  { %701 = vmatpush.bf16.msrb.mxu2 %v1086_v9  ;;  %715 = vmatpush.bf16.msrb.mxu3 %v1150_v11 }
  0x59   :  { %688 = vmatpush.bf16.msrb.mxu1 %v1014_v42 }
  0x5a   :  { %675 = vmatpush.bf16.msrb.mxu0 %v942_v50 }
  0x5c   :  { %702 = vmatpush.bf16.msrb.mxu2 %v1078_v18  ;;  %716 = vmatpush.bf16.msrb.mxu3 %v1142_v21 }
  0x5d   :  { %689 = vmatpush.bf16.msrb.mxu1 %v1006_v54  ;;  %v1328_v54 = vld [vmem:[#allocation10 + $0x28] sm:$0xff] }
  0x60   :  { %703 = vmatpush.bf16.msrb.mxu2 %v1070_v30  ;;  %717 = vmatpush.bf16.msrb.mxu3 %v1134_v33 }
  0xa2   :  { %v163_v1 = vpop.f32.mrf.mxu2  ;;  %v177_v5 = vpop.f32.mrf.mxu3 }
  0xa3   :  { %v164_v17 = vadd.f32 %v163_v1, %v113_v8  ;;  %v178_v19 = vadd.f32 %v177_v5, %v114_v10  ;;  %v1332_v5 = vld [vmem:[#allocation10 + $0x48] sm:$0xff] }
  0xa5   :  { %v210_v28 = vmax.f32 %v164_v17, 0.0  ;;  %v211_v31 = vmax.f32 %v178_v19, 0.0 }
  0xaa   :  { %v165_v20 = vpop.f32.mrf.mxu2  ;;  %v179_v25 = vpop.f32.mrf.mxu3 }
  0xab   :  { %v166_v24 = vadd.f32 %v165_v20, %v113_v8  ;;  %v180_v27 = vadd.f32 %v179_v25, %v114_v10  ;;  %v1331_v8 = vld [vmem:[#allocation10 + $0x40] sm:$0xff] }
  0xad   :  { %v214_v29 = vmax.f32 %v166_v24, 0.0  ;;  %v215_v32 = vmax.f32 %v180_v27, 0.0 }
  0xaf   :  { %v218_v34 = vpack.c.bf16 %v214_v29, %v210_v28  ;;  %v219_v35 = vpack.c.bf16 %v215_v32, %v211_v31 }
  0xb1   :  { %620 = vmatmul.bf16.vlgmr.msra.gmra.mxu0 %v218_v34  ;;  %634 = vmatmul.bf16.vlgmr.msra.gmra.mxu1 %v219_v35 }
  0xb2   :  { %v191_v36 = vpop.f32.mrf.mxu2  ;;  %v205_v37 = vpop.f32.mrf.mxu3  ;;  %862 = vmatpush.bf16.msra.mxu0 %v1330_v52  ;;  %876 = vmatpush.bf16.msra.mxu1 %v1338_v57 }
  0xb3   :  { %v192_v40 = vadd.f32 %v191_v36, %v115_v38  ;;  %v206_v41 = vadd.f32 %v205_v37, %v116_v39 }
  0xb5   :  { %v212_v46 = vmax.f32 %v192_v40, 0.0  ;;  %v213_v48 = vmax.f32 %v206_v41, 0.0 }
  0xb6   :  { %863 = vmatpush.bf16.msra.mxu0 %v1329_v53  ;;  %877 = vmatpush.bf16.msra.mxu1 %v1337_v59 }
  0xba   :  { %v193_v42 = vpop.f32.mrf.mxu2  ;;  %v207_v44 = vpop.f32.mrf.mxu3  ;;  %864 = vmatpush.bf16.msra.mxu0 %v1328_v54  ;;  %878 = vmatpush.bf16.msra.mxu1 %v1336_v61 }
  0xbb   :  { %v194_v43 = vadd.f32 %v193_v42, %v115_v38  ;;  %v208_v45 = vadd.f32 %v207_v44, %v116_v39 }
  0xbd   :  { %v216_v47 = vmax.f32 %v194_v43, 0.0  ;;  %v217_v49 = vmax.f32 %v208_v45, 0.0 }
  0xbe   :  { %865 = vmatpush.bf16.msra.mxu0 %v1327_v55  ;;  %879 = vmatpush.bf16.msra.mxu1 %v1335_v63 }
  0xbf   :  { %v220_v50 = vpack.c.bf16 %v216_v47, %v212_v46  ;;  %v221_v51 = vpack.c.bf16 %v217_v49, %v213_v48  ;;  %v1356_v47 = vld [vmem:[%s1611_s6] ss:$0 sm:$0xff] }
  0xc1   :  { %648 = vmatmul.bf16.vlgmr.msra.gmra.mxu2 %v220_v50  ;;  %676 = vmatmul.bf16.vlgmr.msrb.gmra.mxu0 %v218_v34 }
  0xc2   :  { %662 = vmatmul.bf16.vlgmr.msra.gmra.mxu3 %v221_v51  ;;  %690 = vmatmul.bf16.vlgmr.msrb.gmra.mxu1 %v219_v35 }
  0xc3   :  { %866 = vmatpush.bf16.msra.mxu0 %v1326_v56  ;;  %880 = vmatpush.bf16.msra.mxu1 %v1334_v0 }
  0xc7   :  { %867 = vmatpush.bf16.msra.mxu0 %v1325_v58  ;;  %881 = vmatpush.bf16.msra.mxu1 %v1333_v2 }
  0xcb   :  { %868 = vmatpush.bf16.msra.mxu0 %v1324_v60  ;;  %882 = vmatpush.bf16.msra.mxu1 %v1332_v5 }
  0xcf   :  { %869 = vmatpush.bf16.msra.mxu0 %v1323_v62  ;;  %883 = vmatpush.bf16.msra.mxu1 %v1331_v8 }
  0xd1   :  { %704 = vmatmul.bf16.vlgmr.msrb.gmra.mxu2 %v220_v50 }
  0xd2   :  { %718 = vmatmul.bf16.vlgmr.msrb.gmra.mxu3 %v221_v51 }
 0x12e   :  { %v621_v1 = vpop.f32.mrf.mxu0  ;;  %v635_v4 = vpop.f32.mrf.mxu1 }
 0x12f   :  { %v622_v9 = vadd.f32 %v621_v1, %v288_v6 }
 0x131   :  { %v636_v14 = vadd.f32 %v635_v4, %v622_v9 }
 0x136   :  { %v623_v7 = vpop.f32.mrf.mxu0  ;;  %v637_v13 = vpop.f32.mrf.mxu1 }
 0x137   :  { %v624_v15 = vadd.f32 %v623_v7, %v288_v6 }
 0x139   :  { %v638_v18 = vadd.f32 %v637_v13, %v624_v15 }
 0x13e   :  { %v677_v17 = vpop.f32.mrf.mxu0 }
 0x13f   :  { %v691_v25 = vpop.f32.mrf.mxu1  ;;  %v678_v27 = vadd.f32 %v677_v17, %v289_v23 }
 0x141   :  { %v692_v32 = vadd.f32 %v691_v25, %v678_v27 }
 0x144   :  { %v649_v10 = vpop.f32.mrf.mxu2 }
 0x145   :  { %v663_v11 = vpop.f32.mrf.mxu3  ;;  %v650_v16 = vadd.f32 %v649_v10, %v636_v14 }
 0x146   :  { %v679_v29 = vpop.f32.mrf.mxu0 }
 0x147   :  { %v664_v20 = vadd.f32 %v663_v11, %v650_v16  ;;  %v680_v33 = vadd.f32 %v679_v29, %v289_v23  ;;  %v693_v35 = vpop.f32.mrf.mxu1 }
 0x149   :  { %v724_v12 = vmax.f32 %v664_v20, 0.0  ;;  %v694_v36 = vadd.f32 %v693_v35, %v680_v33 }
 0x14c   :  { %v651_v19 = vpop.f32.mrf.mxu2 }
 0x14d   :  { %v652_v21 = vadd.f32 %v651_v19, %v638_v18  ;;  %v665_v22 = vpop.f32.mrf.mxu3 }
 0x14f   :  { %v666_v24 = vadd.f32 %v665_v22, %v652_v21 }
 0x151   :  { %v726_v26 = vmax.f32 %v666_v24, 0.0 }
 0x153   :  { %v728_v28 = vpack.c.bf16 %v726_v26, %v724_v12 }
 0x154   :  { %v705_v30 = vpop.f32.mrf.mxu2 }
 0x155   :  { %v719_v31 = vpop.f32.mrf.mxu3  ;;  %870 = vmatmul.bf16.vlgmr.msra.gmra.mxu0 %v728_v28  ;;  %v706_v34 = vadd.f32 %v705_v30, %v692_v32 }
 0x157   :  { %v720_v38 = vadd.f32 %v719_v31, %v706_v34 }
 0x159   :  { %v725_v42 = vmax.f32 %v720_v38, 0.0 }
 0x15c   :  { %v707_v37 = vpop.f32.mrf.mxu2 }
 0x15d   :  { %v708_v39 = vadd.f32 %v707_v37, %v694_v36  ;;  %v721_v40 = vpop.f32.mrf.mxu3 }
 0x15f   :  { %v722_v41 = vadd.f32 %v721_v40, %v708_v39 }
 0x161   :  { %v727_v43 = vmax.f32 %v722_v41, 0.0 }
 0x163   :  { %v729_v44 = vpack.c.bf16 %v727_v43, %v725_v42 }
 0x165   :  { %884 = vmatmul.bf16.vlgmr.msra.gmra.mxu1 %v729_v44 }
 0x1d2   :  { %v871_v45 = vpop.f32.mrf.mxu0 }
 0x1d3   :  { %v872_v49 = vadd.f32 %v1356_v47, %v871_v45 }
 0x1da   :  { %v873_v48 = vpop.f32.mrf.mxu0 }
 0x1db   :  { %v874_v50 = vadd.f32 %v1356_v47, %v873_v48 }
 0x1e2   :  { %v885_v46 = vpop.f32.mrf.mxu1 }
 0x1e3   :  { %v886_v52 = vadd.f32 %v885_v46, %v872_v49 }
 0x1ea   :  { %v887_v51 = vpop.f32.mrf.mxu1 }
 0x1eb   :  { %v888_v53 = vadd.f32 %v887_v51, %v874_v50 }
 0x1ed   :  { %v1342_v54 = vpack.c.bf16 %v888_v53, %v886_v52 }
 0x1ef   :  { %1343 = vst [vmem:[#allocation11] sm:$0xff] %v1342_v54  }
 0x1f0   :  { %906 = dma.vmem_to_hbm [thread:$0]  %s899_s8, 128, %s901_s11, [#allocation4], %s1518_s27, %s1518_s27, %s1519_s28  }
 0x1f1   :  { %1507 = dma.done.wait [#allocation4], 128  }
 0x1f2   :  { %1508 = vsyncadd [#allocation4], 4294967168 }
 0x1f3   :  { %911 = vsyncpa [#allocation3], 1 }
 0x1f4   :  { %912 = vsyncpa [#allocation6], 1 }
 0x1f5   :  { %913 = vsyncpa [#allocation9], 1 }
 0x1f6   :  { %914 = vsyncpa [#allocation4], 1 }

</bundles_post_ra>
